<compile_context>
chip_gen: v5e
topology: v5e:2x2
jax: 0.10.0
libtpu: 0.0.40
codegen_flags: <defaults>
</compile_context>

<pallas_src>
import functools

import jax
import jax.numpy as jnp
from jax import lax
from jax.experimental import pallas as pl
from jax.experimental.pallas import tpu as pltpu


def _round_up(x, m):
    return ((x + m - 1) // m) * m


def _largest_divisor_leq(n, cap):
    cap = max(1, min(n, cap))
    for d in range(cap, 0, -1):
        if n % d == 0:
            return d
    return 1


def _sdpa_kernel(q_ref, k_ref, v_ref, out_ref, attn_ref, *, inv_temp, kv_len):
    """Unmasked variant. Refs: q (bh, tq, D), k/v (bh, Lk_pad, D)."""
    q = q_ref[...] * jnp.asarray(inv_temp, q_ref.dtype)            # fold 1/temperature into q
    # QK^T: contraction over last dim of both operands -> no explicit transpose.
    s = jnp.einsum("bqd,bkd->bqk", q, k_ref[...],
                   preferred_element_type=jnp.float32)             # (bh, tq, Lk_pad)
    if s.shape[-1] != kv_len:                                      # static: mask padded key cols
        col = lax.broadcasted_iota(jnp.int32, s.shape, dimension=2)
        s = jnp.where(col < kv_len, s, -jnp.inf)
    s_max = jnp.max(s, axis=-1, keepdims=True)
    e = jnp.exp(s - s_max)
    denom = jnp.sum(e, axis=-1, keepdims=True)
    attn = e * pl.reciprocal(denom, approx=False)                  # per-row recip + vmul
    attn_ref[...] = attn.astype(attn_ref.dtype)                    # dropout (eval) == identity
    out = jnp.einsum("bqk,bkd->bqd", attn.astype(v_ref.dtype), v_ref[...],
                     preferred_element_type=jnp.float32)
    out_ref[...] = out.astype(out_ref.dtype)


def _sdpa_kernel_masked(q_ref, k_ref, v_ref, m_ref, out_ref, attn_ref, *, inv_temp):
    """Masked variant. m_ref is int8 (bh, tq, Lk_pad); nonzero == masked out
    (padded key columns are already 1 in the mask)."""
    q = q_ref[...] * jnp.asarray(inv_temp, q_ref.dtype)
    s = jnp.einsum("bqd,bkd->bqk", q, k_ref[...],
                   preferred_element_type=jnp.float32)
    s = jnp.where(m_ref[...] != 0, -jnp.inf, s)                    # masked_fill(-inf), torch parity
    s_max = jnp.max(s, axis=-1, keepdims=True)
    e = jnp.exp(s - s_max)
    denom = jnp.sum(e, axis=-1, keepdims=True)
    attn = e * pl.reciprocal(denom, approx=False)
    attn_ref[...] = attn.astype(attn_ref.dtype)
    out = jnp.einsum("bqk,bkd->bqd", attn.astype(v_ref.dtype), v_ref[...],
                     preferred_element_type=jnp.float32)
    out_ref[...] = out.astype(out_ref.dtype)


def scaled_dot_product_attention(q, k, v, temperature, mask=None):
    """Pallas implementation of ScaledDotProductAttention.forward.

    Args:
      q: (B, H, Lq, D), k/v: (B, H, Lk, D) (f32 or bf16).
      temperature: python float.
      mask: optional boolean-like, broadcastable to (B, H, Lq, Lk); True/nonzero
        entries are filled with -inf before the softmax.

    Returns:
      (out, attn): out (B, H, Lq, D), attn (B, H, Lq, Lk) in q.dtype.
    """
    B, H, Lq, D = q.shape
    Lk = k.shape[2]
    BH = B * H

    q3 = q.reshape(BH, Lq, D)
    k3 = k.reshape(BH, Lk, D)
    v3 = v.reshape(BH, Lk, D)

    # Pad key length to a lane-dense multiple of 128; pad/tile the query length.
    lk_pad = _round_up(Lk, 128)
    if Lq <= 128:
        tq = _round_up(Lq, 8)
        lq_pad = tq
    else:
        tq = 128
        lq_pad = _round_up(Lq, 128)

    if lq_pad != Lq:
        q3 = jnp.pad(q3, ((0, 0), (0, lq_pad - Lq), (0, 0)))
    if lk_pad != Lk:
        k3 = jnp.pad(k3, ((0, 0), (0, lk_pad - Lk), (0, 0)))
        v3 = jnp.pad(v3, ((0, 0), (0, lk_pad - Lk), (0, 0)))

    # Heads per grid step: amortize ~0.35us/step overhead when tiles are small,
    # but keep >= 2 grid steps so both v7x TensorCores get work.
    cap = max(1, 256 // tq)
    if BH >= 2:
        cap = min(cap, max(1, BH // 2))
    bh_blk = _largest_divisor_leq(BH, cap)

    inv_temp = 1.0 / float(temperature)
    attn_dtype = q.dtype

    bh_map = lambda b, i: (b, i, 0)
    kv_map = lambda b, i: (b, 0, 0)

    in_specs = [
        pl.BlockSpec((bh_blk, tq, D), bh_map),       # q
        pl.BlockSpec((bh_blk, lk_pad, D), kv_map),   # k
        pl.BlockSpec((bh_blk, lk_pad, D), kv_map),   # v
    ]
    args = [q3, k3, v3]

    if mask is None:
        kernel = functools.partial(_sdpa_kernel, inv_temp=inv_temp, kv_len=Lk)
    else:
        m = jnp.broadcast_to(mask, (B, H, Lq, Lk)).astype(jnp.int8).reshape(BH, Lq, Lk)
        if lk_pad != Lk:   # padded key columns -> masked out
            m = jnp.pad(m, ((0, 0), (0, 0), (0, lk_pad - Lk)), constant_values=1)
        if lq_pad != Lq:   # padded query rows -> keep valid (rows are discarded later)
            m = jnp.pad(m, ((0, 0), (0, lq_pad - Lq), (0, 0)), constant_values=0)
        in_specs.append(pl.BlockSpec((bh_blk, tq, lk_pad), bh_map))
        args.append(m)
        kernel = functools.partial(_sdpa_kernel_masked, inv_temp=inv_temp)

    # VMEM budget: double-buffered input/output tiles + f32 score intermediate.
    itemsize = q.dtype.itemsize
    tile_bytes = (
        bh_blk * tq * D * itemsize                                   # q tile
        + 2 * bh_blk * lk_pad * D * itemsize                         # k, v tiles
        + bh_blk * tq * D * itemsize                                 # out tile
        + bh_blk * tq * lk_pad * jnp.dtype(attn_dtype).itemsize      # attn tile
        + (bh_blk * tq * lk_pad if mask is not None else 0)          # int8 mask tile
    )
    scores_bytes = bh_blk * tq * lk_pad * 4
    vmem_limit = int(min(max(32 << 20, 2 * tile_bytes + scores_bytes + (4 << 20)),
                         56 << 20))

    grid = (BH // bh_blk, lq_pad // tq)

    out_p, attn_p = pl.pallas_call(
        kernel,
        out_shape=(
            jax.ShapeDtypeStruct((BH, lq_pad, D), q.dtype),
            jax.ShapeDtypeStruct((BH, lq_pad, lk_pad), attn_dtype),
        ),
        grid_spec=pltpu.PrefetchScalarGridSpec(
            num_scalar_prefetch=0,
            grid=grid,
            in_specs=in_specs,
            out_specs=[
                pl.BlockSpec((bh_blk, tq, D), bh_map),       # out
                pl.BlockSpec((bh_blk, tq, lk_pad), bh_map),  # attn
            ],
        ),
        compiler_params=pltpu.CompilerParams(
            dimension_semantics=("parallel", "parallel"),
            vmem_limit_bytes=vmem_limit,
        ),
    )(*args)

    out = out_p[:, :Lq, :].reshape(B, H, Lq, D)
    attn = attn_p[:, :Lq, :Lk].reshape(B, H, Lq, Lk)
    return out, attn


def _reference(q, k, v, temperature, mask=None):
    attn = jnp.einsum("bhqd,bhkd->bhqk", q, k) / temperature
    if mask is not None:
        attn = jnp.where(mask, -jnp.inf, attn)
    attn = jax.nn.softmax(attn, axis=-1)
    out = jnp.einsum("bhqk,bhkd->bhqd", attn, v)
    return out, attn


if __name__ == "__main__":
    key = jax.random.PRNGKey(0)
    kq, kk, kv = jax.random.split(key, 3)

    B, H, L, D = 2, 4, 8, 32
    temperature = float(D) ** 0.5

    q = jax.random.normal(kq, (B, H, L, D), dtype=jnp.float32)
    k = jax.random.normal(kk, (B, H, L, D), dtype=jnp.float32)
    v = jax.random.normal(kv, (B, H, L, D), dtype=jnp.float32)

    # Unmasked path (no mask tensor is created or DMA'd).
    out, attn = scaled_dot_product_attention(q, k, v, temperature, mask=None)
    jax.block_until_ready((out, attn))
    ref_out, ref_attn = _reference(q, k, v, temperature)
    assert jnp.allclose(out, ref_out, atol=1e-5, rtol=1e-5)
    assert jnp.allclose(attn, ref_attn, atol=1e-5, rtol=1e-5)

    # Masked path (causal mask; True == masked out), int8 inside the kernel.
    causal = jnp.triu(jnp.ones((L, L), dtype=bool), k=1)[None, None]
    out_m, attn_m = scaled_dot_product_attention(q, k, v, temperature, mask=causal)
    jax.block_until_ready((out_m, attn_m))
    ref_out_m, ref_attn_m = _reference(q, k, v, temperature, mask=causal)
    assert jnp.allclose(out_m, ref_out_m, atol=1e-5, rtol=1e-5)
    assert jnp.allclose(attn_m, ref_attn_m, atol=1e-5, rtol=1e-5)

    print("KERNEL_OK")
</pallas_src>

<mosaic_0001>
module attributes {stable_mosaic.version = 11 : i64} {
  func.func @_sdpa_kernel(%arg0: i32, %arg1: i32, %arg2: memref<4x8x32xf32, #tpu.memory_space<vmem>>, %arg3: memref<4x128x32xf32, #tpu.memory_space<vmem>>, %arg4: memref<4x128x32xf32, #tpu.memory_space<vmem>>, %arg5: memref<4x8x32xf32, #tpu.memory_space<vmem>>, %arg6: memref<4x8x128xf32, #tpu.memory_space<vmem>>) attributes {dimension_semantics = [#tpu.dimension_semantics<parallel>, #tpu.dimension_semantics<parallel>], iteration_bounds = array<i64: 2, 1>, scalar_prefetch = 0 : i64, scratch_operands = 0 : i64, tpu.core_type = #tpu.core_type<tc>, window_params = [{transform_indices = @transform_0, window_bounds = array<i64: 4, 8, 32>}, {transform_indices = @transform_1, window_bounds = array<i64: 4, 128, 32>}, {transform_indices = @transform_2, window_bounds = array<i64: 4, 128, 32>}, {transform_indices = @transform_3, window_bounds = array<i64: 4, 8, 32>}, {transform_indices = @transform_4, window_bounds = array<i64: 4, 8, 128>}]} {
    %c0 = arith.constant 0 : index
    %c0_0 = arith.constant 0 : index
    %c0_1 = arith.constant 0 : index
    %0 = vector.load %arg2[%c0, %c0_0, %c0_1] : memref<4x8x32xf32, #tpu.memory_space<vmem>>, vector<4x8x32xf32>
    %cst = arith.constant 0.176776692 : f32
    %1 = vector.broadcast %cst : f32 to vector<4x8x32xf32>
    %2 = arith.mulf %0, %1 : vector<4x8x32xf32>
    %c0_2 = arith.constant 0 : index
    %c0_3 = arith.constant 0 : index
    %c0_4 = arith.constant 0 : index
    %3 = vector.load %arg3[%c0_2, %c0_3, %c0_4] : memref<4x128x32xf32, #tpu.memory_space<vmem>>, vector<4x128x32xf32>
    "tpu.trace_start"() <{level = 10 : i32, message = "bqd,bkd->bqk"}> : () -> ()
    %cst_5 = arith.constant dense<0.000000e+00> : vector<4x8x128xf32>
    %4 = tpu.matmul %2, %3, %cst_5 {dimension_numbers = #tpu.dot_dimension_numbers<[2], [2], [1], [1], [0, 0, 0, 1, 1, 1], [0], [0]>} : vector<4x8x32xf32>, vector<4x128x32xf32>, vector<4x8x128xf32> -> vector<4x8x128xf32>
    "tpu.trace_stop"() : () -> ()
    %5 = tpu.iota {dimensions = array<i32: 2>} : vector<4x8x128xi32>
    %c8_i32 = arith.constant 8 : i32
    %6 = vector.broadcast %c8_i32 : i32 to vector<4x8x128xi32>
    %7 = arith.cmpi slt, %5, %6 : vector<4x8x128xi32>
    %cst_6 = arith.constant 0xFF800000 : f32
    %8 = vector.broadcast %cst_6 : f32 to vector<4x8x128xf32>
    %9 = arith.select %7, %4, %8 : vector<4x8x128xi1>, vector<4x8x128xf32>
    %cst_7 = arith.constant dense<0xFF800000> : vector<4x8xf32>
    %10 = vector.multi_reduction <maximumf>, %9, %cst_7 [2] : vector<4x8x128xf32> to vector<4x8xf32>
    %11 = vector.shape_cast %10 : vector<4x8xf32> to vector<4x8x1xf32>
    %12 = vector.broadcast %11 : vector<4x8x1xf32> to vector<4x8x128xf32>
    %13 = arith.subf %9, %12 : vector<4x8x128xf32>
    %14 = math.exp %13 : vector<4x8x128xf32>
    %cst_8 = arith.constant dense<0.000000e+00> : vector<4x8xf32>
    %15 = vector.multi_reduction <add>, %14, %cst_8 [2] : vector<4x8x128xf32> to vector<4x8xf32>
    %16 = vector.shape_cast %15 : vector<4x8xf32> to vector<4x8x1xf32>
    %17 = tpu.reciprocal %16 : vector<4x8x1xf32> -> vector<4x8x1xf32>
    %18 = vector.broadcast %17 : vector<4x8x1xf32> to vector<4x8x128xf32>
    %19 = arith.mulf %14, %18 : vector<4x8x128xf32>
    %c0_9 = arith.constant 0 : index
    %c0_10 = arith.constant 0 : index
    %c0_11 = arith.constant 0 : index
    %20 = vector.load %arg6[%c0_9, %c0_10, %c0_11] : memref<4x8x128xf32, #tpu.memory_space<vmem>>, vector<4x8x128xf32>
    tpu.vector_store %arg6[%c0_9, %c0_10, %c0_11], %19 {strides = array<i32>} : memref<4x8x128xf32, #tpu.memory_space<vmem>>, vector<4x8x128xf32>,
    %c0_12 = arith.constant 0 : index
    %c0_13 = arith.constant 0 : index
    %c0_14 = arith.constant 0 : index
    %21 = vector.load %arg4[%c0_12, %c0_13, %c0_14] : memref<4x128x32xf32, #tpu.memory_space<vmem>>, vector<4x128x32xf32>
    "tpu.trace_start"() <{level = 10 : i32, message = "bqk,bkd->bqd"}> : () -> ()
    %cst_15 = arith.constant dense<0.000000e+00> : vector<4x8x32xf32>
    %22 = tpu.matmul %19, %21, %cst_15 {dimension_numbers = #tpu.dot_dimension_numbers<[2], [1], [1], [2], [0, 0, 0, 1, 1, 2], [0], [0]>} : vector<4x8x128xf32>, vector<4x128x32xf32>, vector<4x8x32xf32> -> vector<4x8x32xf32>
    "tpu.trace_stop"() : () -> ()
    %c0_16 = arith.constant 0 : index
    %c0_17 = arith.constant 0 : index
    %c0_18 = arith.constant 0 : index
    %23 = vector.load %arg5[%c0_16, %c0_17, %c0_18] : memref<4x8x32xf32, #tpu.memory_space<vmem>>, vector<4x8x32xf32>
    tpu.vector_store %arg5[%c0_16, %c0_17, %c0_18], %22 {strides = array<i32>} : memref<4x8x32xf32, #tpu.memory_space<vmem>>, vector<4x8x32xf32>,
    return
  }
  func.func @transform_0(%arg0: i32, %arg1: i32) -> (i32, i32, i32) {
    %c0_i32 = arith.constant 0 : i32
    %c0_i32_0 = arith.constant 0 : i32
    return %arg0, %arg1, %c0_i32 : i32, i32, i32
  }
  func.func @transform_1(%arg0: i32, %arg1: i32) -> (i32, i32, i32) {
    %c0_i32 = arith.constant 0 : i32
    %c0_i32_0 = arith.constant 0 : i32
    %c0_i32_1 = arith.constant 0 : i32
    return %arg0, %c0_i32, %c0_i32_0 : i32, i32, i32
  }
  func.func @transform_2(%arg0: i32, %arg1: i32) -> (i32, i32, i32) {
    %c0_i32 = arith.constant 0 : i32
    %c0_i32_0 = arith.constant 0 : i32
    %c0_i32_1 = arith.constant 0 : i32
    return %arg0, %c0_i32, %c0_i32_0 : i32, i32, i32
  }
  func.func @transform_3(%arg0: i32, %arg1: i32) -> (i32, i32, i32) {
    %c0_i32 = arith.constant 0 : i32
    %c0_i32_0 = arith.constant 0 : i32
    return %arg0, %arg1, %c0_i32 : i32, i32, i32
  }
  func.func @transform_4(%arg0: i32, %arg1: i32) -> (i32, i32, i32) {
    %c0_i32 = arith.constant 0 : i32
    %c0_i32_0 = arith.constant 0 : i32
    return %arg0, %arg1, %c0_i32 : i32, i32, i32
  }
}

</mosaic_0001>

<bundles_post_ra>
// kernel: tpu_custom_call.1
= control target key start
LH: loop header
LB: loop body
LE: loop exit
PB: predicated region body
PF: predicated region fallthrough
CT: control target
= control target key end

     0   :  { %10 = vsyncpa [#allocation3], 0  ;;  %s1743_s0 = inlined_call_operand.vmem [shape: f32[8,8,32], index: 0, kind: input, shape index: {}]   ;;  %s1744_s1 = inlined_call_operand.vmem [shape: f32[8,128,32], index: 1, kind: input, shape index: {}]   ;;  %s1745_s2 = inlined_call_operand.vmem [shape: f32[8,128,32], index: 2, kind: input, shape index: {}]   ;;  %s1746_s3 = inlined_call_operand.hbm [shape: f32[8,8,32], index: 3, kind: output, shape index: {0}]   ;;  %s1747_s4 = inlined_call_operand.hbm [shape: f32[8,8,128], index: 4, kind: output, shape index: {1}]  }
   0x1   :  { %12 = vsyncpa [#allocation3 + $0x1], 0 }
   0x2   :  { %13 = vsyncpa [#allocation5], 0 }
   0x3   :  { %15 = vsyncpa [#allocation5 + $0x1], 0  ;;  %s1378_s15 = smov 0   ;;  %s1380_s16 = smov 0  }
   0x4   :  { %s1382_s17 = smov 0   ;;  %s1384_s18 = smov 0  }
   0x5   :  { %s1386_s19 = smov 0   ;;  %s1388_s20 = smov 0  }
   0x6 LB: > { %s1066_s21 = sadd.s32 4294967295, %s1349_s20   ;;  %s1067_s22 = sadd.s32 4294967294, %s1349_s20   ;;  %s1349_s20 = sphi %s1388_s20, %s21_s20   ;;  %s1345_s19 = sphi %s1386_s19, %s1754_s19   ;;  %s1341_s18 = sphi %s1384_s18, %s1753_s18   ;;  %s1337_s17 = sphi %s1382_s17, %s1752_s17   ;;  %s1333_s16 = sphi %s1380_s16, %s1751_s16   ;;  %s1329_s15 = sphi %s1378_s15, %s1750_s15  }
   0x7   : > { %s33_s23 = sadd.s32 1, %s1345_s19  ;;  %s122_s24 = sadd.s32 1, %s1337_s17 }
   0x8   : > { %p35_p0 = scmp.ge.s32.totalorder %s33_s23, 2  ;;  %p132_p1 = scmp.ne.s32.totalorder %s1337_s17, %s1333_s16 }
   0x9   : > { %p133_p2 = scmp.eq.s32.totalorder %s1066_s21, 1  ;;  %p138_p3 = scmp.ne.s32.totalorder %s1333_s16, %s1329_s15 }
   0xa   : > { %s1756_s23 = smov (%p35_p0, %s33_s23), 0  ;;  %p139_p5 = scmp.eq.s32.totalorder %s1067_s22, 1 }
   0xb   : > { %p1418_p4 = por %p133_p2, %p132_p1  ;;  %s117_s26 = ssub.s32 %s1345_s19, %s1756_s23 }
   0xc   : > { %p1070_p6 = scmp.ge.s32.totalorder %s1349_s20, 1  ;;  %p120_p7 = scmp.eq.s32.totalorder %s117_s26, 0 }
   0xd   : > { %p1425_p8 = por %p139_p5, %p138_p3  ;;  %p217_p9 = scmp.lt.s32.totalorder %s1349_s20, 3 }
   0xe   : > { %s1431_s28 = scalar_select %p120_p7, %s1337_s17, %s122_s24  }
   0xf   : > { %p218_p10 = pnand %p1070_p6, %p217_p9 }
  0x10   : > { %s1073_s29 = sshll.u32 (!%p218_p10), %s1341_s18, 2  ;;  %s1664_s21 = sand.u32 (!%p218_p10), 1, %s1333_s16  }
  0x11   : > { %221 = sbr.rel (%p218_p10) target bundleno = 628 (0x274), region = 32  ;;  %p264_p11 = scmp.lt.s32.totalorder (!%p218_p10), %s1073_s29, 7 }
  0x12   : > { %s1071_s22 = sshll.u32 (!%p218_p10), %s1664_s21, 5  ;;  %s1259_s13 = scalar_lea.hbm (!%p218_p10), %s1747_s4, 64 }
  0x13   : > { %s1670_s24 = scalar_lea.vmem (!%p218_p10), [#allocation4], %s1071_s22 }
  0x14   : > { %s929_s26 = sshll.u32 (!%p218_p10), %s1670_s24, 4  ;;  %s930_s26 = int_to_ptr.vmem [resolvable:$true] %s929_s26 }
  0x16   : > { %s1758_s29 = smov (!%p264_p11, %s1073_s29), 7  ;;  %vm360_vm0 = vcmask 261120  }
  0x17   : > { %s1157_s30 = sshll.u32 %s1758_s29, 7  ;;  %s1074_s8 = sshll.u32 %s1758_s29, 3 }
  0x18   : > { %s1442_s7 = scalar_lea.vmem %s1744_s1, %s1157_s30  ;;  %s270_s11 = scalar_lea.vmem %s1743_s0, %s1074_s8 }
  0x19   : > { %v311_v0 = vld [vmem:[%s1442_s7 + $0x78] sm:$0xff]  ;;  %v310_v3 = vld [vmem:[%s1442_s7 + $0x70] sm:$0xff]  ;;  %v309_v8 = vld [vmem:[%s1442_s7 + $0x68] sm:$0xff]  ;;  %s1585_s14 = scalar_lea.vmem %s1745_s2, %s1157_s30  ;;  %s1159_s29 = sshll.u32 %s1341_s18, 5 }
  0x1a   : > { %v343_v1 = vld [vmem:[%s1442_s7 + $0x178] sm:$0xff]  ;;  %1081 = vmatpush.xpose.msk.msra.mxu0 %vm360_vm0, %v311_v0  ;;  %v342_v4 = vld [vmem:[%s1442_s7 + $0x170] sm:$0xff]  ;;  %v341_v9 = vld [vmem:[%s1442_s7 + $0x168] sm:$0xff]  ;;  %s928_s6 = scalar_lea.hbm %s1747_s4, %s1159_s29  ;;  %s898_s8 = scalar_lea.sflag [#allocation5], %s1664_s21 }
  0x1b   : > { %1115 = vmatpush.xpose.msk.msra.mxu2 %vm360_vm0, %v343_v1  ;;  %v327_v2 = vld [vmem:[%s1442_s7 + $0xf8] sm:$0xff]  ;;  %v326_v6 = vld [vmem:[%s1442_s7 + $0xf0] sm:$0xff]  ;;  %v325_v10 = vld [vmem:[%s1442_s7 + $0xe8] sm:$0xff] }
  0x1c   : > { %1098 = vmatpush.xpose.msk.msra.mxu1 %vm360_vm0, %v327_v2  ;;  %v359_v5 = vld [vmem:[%s1442_s7 + $0x1f8] sm:$0xff]  ;;  %v358_v7 = vld [vmem:[%s1442_s7 + $0x1f0] sm:$0xff]  ;;  %v357_v11 = vld [vmem:[%s1442_s7 + $0x1e8] sm:$0xff] }
  0x1d   : > { %1132 = vmatpush.xpose.msk.msra.mxu3 %vm360_vm0, %v359_v5  ;;  %v308_v12 = vld [vmem:[%s1442_s7 + $0x60] sm:$0xff]  ;;  %v307_v16 = vld [vmem:[%s1442_s7 + $0x58] sm:$0xff]  ;;  %v306_v20 = vld [vmem:[%s1442_s7 + $0x50] sm:$0xff] }
  0x1e   : > { %1082 = vmatpush.xpose.msk.msra.mxu0 %vm360_vm0, %v310_v3  ;;  %v340_v13 = vld [vmem:[%s1442_s7 + $0x160] sm:$0xff]  ;;  %v339_v17 = vld [vmem:[%s1442_s7 + $0x158] sm:$0xff]  ;;  %v338_v21 = vld [vmem:[%s1442_s7 + $0x150] sm:$0xff] }
  0x1f   : > { %1116 = vmatpush.xpose.msk.msra.mxu2 %vm360_vm0, %v342_v4  ;;  %v324_v14 = vld [vmem:[%s1442_s7 + $0xe0] sm:$0xff]  ;;  %v323_v18 = vld [vmem:[%s1442_s7 + $0xd8] sm:$0xff]  ;;  %v322_v22 = vld [vmem:[%s1442_s7 + $0xd0] sm:$0xff] }
  0x20   : > { %1099 = vmatpush.xpose.msk.msra.mxu1 %vm360_vm0, %v326_v6  ;;  %v356_v15 = vld [vmem:[%s1442_s7 + $0x1e0] sm:$0xff]  ;;  %v355_v19 = vld [vmem:[%s1442_s7 + $0x1d8] sm:$0xff]  ;;  %v354_v23 = vld [vmem:[%s1442_s7 + $0x1d0] sm:$0xff] }
  0x21   : > { %1133 = vmatpush.xpose.msk.msra.mxu3 %vm360_vm0, %v358_v7  ;;  %v305_v24 = vld [vmem:[%s1442_s7 + $0x48] sm:$0xff]  ;;  %v304_v28 = vld [vmem:[%s1442_s7 + $0x40] sm:$0xff]  ;;  %v303_v32 = vld [vmem:[%s1442_s7 + $0x38] sm:$0xff] }
  0x22   : > { %1083 = vmatpush.xpose.msk.msra.mxu0 %vm360_vm0, %v309_v8  ;;  %v337_v25 = vld [vmem:[%s1442_s7 + $0x148] sm:$0xff]  ;;  %v336_v29 = vld [vmem:[%s1442_s7 + $0x140] sm:$0xff]  ;;  %v335_v33 = vld [vmem:[%s1442_s7 + $0x138] sm:$0xff]  ;;  %v645_v8 = vlaneseq }
  0x23   : > { %1117 = vmatpush.xpose.msk.msra.mxu2 %vm360_vm0, %v341_v9  ;;  %v321_v26 = vld [vmem:[%s1442_s7 + $0xc8] sm:$0xff]  ;;  %v320_v30 = vld [vmem:[%s1442_s7 + $0xc0] sm:$0xff]  ;;  %v319_v34 = vld [vmem:[%s1442_s7 + $0xb8] sm:$0xff] }
  0x24   : > { %1100 = vmatpush.xpose.msk.msra.mxu1 %vm360_vm0, %v325_v10  ;;  %v353_v27 = vld [vmem:[%s1442_s7 + $0x1c8] sm:$0xff]  ;;  %v352_v31 = vld [vmem:[%s1442_s7 + $0x1c0] sm:$0xff]  ;;  %v351_v35 = vld [vmem:[%s1442_s7 + $0x1b8] sm:$0xff]  ;;  %v646_v9 = vand.u32 127, %v645_v8 }
  0x25   : > { %1134 = vmatpush.xpose.msk.msra.mxu3 %vm360_vm0, %v357_v11  ;;  %v302_v36 = vld [vmem:[%s1442_s7 + $0x30] sm:$0xff]  ;;  %v301_v40 = vld [vmem:[%s1442_s7 + $0x28] sm:$0xff]  ;;  %v300_v44 = vld [vmem:[%s1442_s7 + $0x20] sm:$0xff] }
  0x26   : > { %1084 = vmatpush.xpose.msk.msra.mxu0 %vm360_vm0, %v308_v12  ;;  %v334_v37 = vld [vmem:[%s1442_s7 + $0x130] sm:$0xff]  ;;  %v333_v41 = vld [vmem:[%s1442_s7 + $0x128] sm:$0xff]  ;;  %v332_v45 = vld [vmem:[%s1442_s7 + $0x120] sm:$0xff]  ;;  %vm647_vm1 = vcmp.lt.s32.totalorder %v646_v9, 8 }
  0x27   : > { %1118 = vmatpush.xpose.msk.msra.mxu2 %vm360_vm0, %v340_v13  ;;  %v318_v38 = vld [vmem:[%s1442_s7 + $0xb0] sm:$0xff]  ;;  %v317_v42 = vld [vmem:[%s1442_s7 + $0xa8] sm:$0xff]  ;;  %v316_v46 = vld [vmem:[%s1442_s7 + $0xa0] sm:$0xff] }
  0x28   : > { %1101 = vmatpush.xpose.msk.msra.mxu1 %vm360_vm0, %v324_v14  ;;  %v350_v39 = vld [vmem:[%s1442_s7 + $0x1b0] sm:$0xff]  ;;  %v349_v43 = vld [vmem:[%s1442_s7 + $0x1a8] sm:$0xff]  ;;  %v348_v47 = vld [vmem:[%s1442_s7 + $0x1a0] sm:$0xff] }
  0x29   : > { %1135 = vmatpush.xpose.msk.msra.mxu3 %vm360_vm0, %v356_v15  ;;  %v299_v48 = vld [vmem:[%s1442_s7 + $0x18] sm:$0xff]  ;;  %v298_v52 = vld [vmem:[%s1442_s7 + $0x10] sm:$0xff]  ;;  %v297_v56 = vld [vmem:[%s1442_s7 + $0x8] sm:$0xff] }
  0x2a   : > { %1085 = vmatpush.xpose.msk.msra.mxu0 %vm360_vm0, %v307_v16  ;;  %v331_v49 = vld [vmem:[%s1442_s7 + $0x118] sm:$0xff]  ;;  %v330_v53 = vld [vmem:[%s1442_s7 + $0x110] sm:$0xff]  ;;  %v329_v57 = vld [vmem:[%s1442_s7 + $0x108] sm:$0xff] }
  0x2b   : > { %1119 = vmatpush.xpose.msk.msra.mxu2 %vm360_vm0, %v339_v17  ;;  %v315_v50 = vld [vmem:[%s1442_s7 + $0x98] sm:$0xff]  ;;  %v314_v54 = vld [vmem:[%s1442_s7 + $0x90] sm:$0xff]  ;;  %v313_v58 = vld [vmem:[%s1442_s7 + $0x88] sm:$0xff] }
  0x2c   : > { %1102 = vmatpush.xpose.msk.msra.mxu1 %vm360_vm0, %v323_v18  ;;  %v347_v51 = vld [vmem:[%s1442_s7 + $0x198] sm:$0xff]  ;;  %v346_v55 = vld [vmem:[%s1442_s7 + $0x190] sm:$0xff]  ;;  %v345_v59 = vld [vmem:[%s1442_s7 + $0x188] sm:$0xff] }
  0x2d   : > { %1136 = vmatpush.xpose.msk.msra.mxu3 %vm360_vm0, %v355_v19  ;;  %v288_v60 = vld [vmem:[%s270_s11] sm:$0xff]  ;;  %v290_v61 = vld [vmem:[%s270_s11 + $0x10] sm:$0xff]  ;;  %v289_v0 = vld [vmem:[%s270_s11 + $0x8] sm:$0xff] }
  0x2e   : > { %1086 = vmatpush.xpose.msk.msra.mxu0 %vm360_vm0, %v306_v20  ;;  %v296_v62 = vld [vmem:[%s1442_s7] sm:$0xff]  ;;  %v291_v2 = vld [vmem:[%s270_s11 + $0x18] sm:$0xff]  ;;  %v292_v3 = vmul.f32 0.17677669, %v288_v60  ;;  %v294_v4 = vmul.f32 0.17677669, %v290_v61 }
  0x2f   : > { %1120 = vmatpush.xpose.msk.msra.mxu2 %vm360_vm0, %v338_v21  ;;  %v328_v63 = vld [vmem:[%s1442_s7 + $0x100] sm:$0xff]  ;;  %v293_v6 = vmul.f32 0.17677669, %v289_v0  ;;  %v295_v7 = vmul.f32 0.17677669, %v291_v2  ;;  %v759_v18 = vld [vmem:[%s1585_s14 + $0x78] sm:$0xff] }
  0x30   : > { %1103 = vmatpush.xpose.msk.msra.mxu1 %vm360_vm0, %v322_v22  ;;  %v312_v1 = vld [vmem:[%s1442_s7 + $0x80] sm:$0xff]  ;;  %v758_v19 = vld [vmem:[%s1585_s14 + $0x70] sm:$0xff]  ;;  %v791_v20 = vld [vmem:[%s1585_s14 + $0x178] sm:$0xff] }
  0x31   : > { %1137 = vmatpush.xpose.msk.msra.mxu3 %vm360_vm0, %v354_v23  ;;  %v344_v5 = vld [vmem:[%s1442_s7 + $0x180] sm:$0xff]  ;;  %v757_v21 = vld [vmem:[%s1585_s14 + $0x68] sm:$0xff]  ;;  %v775_v22 = vld [vmem:[%s1585_s14 + $0xf8] sm:$0xff]  ;;  %s931_s7 = sshll.u32 %s928_s6, 4  ;;  %s932_s7 = int_to_ptr.hbm [resolvable:$true] %s931_s7 }
  0x32   : > { %1087 = vmatpush.xpose.msk.msra.mxu0 %vm360_vm0, %v305_v24  ;;  %v790_v23 = vld [vmem:[%s1585_s14 + $0x170] sm:$0xff]  ;;  %v749_v60 = vld [vmem:[%s1585_s14 + $0x28] sm:$0xff]  ;;  %v748_v0 = vld [vmem:[%s1585_s14 + $0x20] sm:$0xff]  ;;  %s1253_s9 = sshra.s32 %s932_s7, 4  ;;  %s1254_s9 = int_to_ptr.hbm [resolvable:$true] %s1253_s9 }
  0x33   : > { %1121 = vmatpush.xpose.msk.msra.mxu2 %vm360_vm0, %v337_v25  ;;  %v774_v24 = vld [vmem:[%s1585_s14 + $0xf0] sm:$0xff]  ;;  %v789_v25 = vld [vmem:[%s1585_s14 + $0x168] sm:$0xff]  ;;  %v783_v2 = vld [vmem:[%s1585_s14 + $0x138] sm:$0xff]  ;;  %s1255_s10 = scalar_lea.hbm %s1254_s9, 32  ;;  %p1260_p1 = scmp.lt.s32.totalorder %s1254_s9, %s1747_s4 }
  0x34   : > { %1104 = vmatpush.xpose.msk.msra.mxu1 %vm360_vm0, %v321_v26  ;;  %v756_v26 = vld [vmem:[%s1585_s14 + $0x60] sm:$0xff]  ;;  %v769_v61 = vld [vmem:[%s1585_s14 + $0xc8] sm:$0xff]  ;;  %v746_v8 = vld [vmem:[%s1585_s14 + $0x10] sm:$0xff]  ;;  %p1256_p12 = scmp.ne.s32.totalorder %s1254_s9, %s1255_s10  ;;  %p1261_p2 = scmp.lt.s32.totalorder %s1259_s13, %s1255_s10 }
  0x35   : > { %1138 = vmatpush.xpose.msk.msra.mxu3 %vm360_vm0, %v353_v27  ;;  %v766_v9 = vld [vmem:[%s1585_s14 + $0xb0] sm:$0xff] }
  0x36   : > { %1088 = vmatpush.xpose.msk.msra.mxu0 %vm360_vm0, %v304_v28  ;;  %v755_v28 = vld [vmem:[%s1585_s14 + $0x58] sm:$0xff]  ;;  %p1257_p13 = pnand %p1256_p12, %p1418_p4  ;;  %p1262_p3 = por %p1261_p2, %p1260_p1 }
  0x37   : > { %1122 = vmatpush.xpose.msk.msra.mxu2 %vm360_vm0, %v336_v29 }
  0x38   : > { %1105 = vmatpush.xpose.msk.msra.mxu1 %vm360_vm0, %v320_v30  ;;  %v754_v30 = vld [vmem:[%s1585_s14 + $0x50] sm:$0xff]  ;;  %p1258_p0 = pneg %p1257_p13 }
  0x39   : > { %1139 = vmatpush.xpose.msk.msra.mxu3 %vm360_vm0, %v352_v31 }
  0x3a   : > { %1089 = vmatpush.xpose.msk.msra.mxu0 %vm360_vm0, %v303_v32  ;;  %p1263_p5 = pnand %p1262_p3, %p1258_p0 }
  0x3b   : > { %1123 = vmatpush.xpose.msk.msra.mxu2 %vm360_vm0, %v335_v33 }
  0x3c   : > { %1106 = vmatpush.xpose.msk.msra.mxu1 %vm360_vm0, %v319_v34 }
  0x3d   : > { %1140 = vmatpush.xpose.msk.msra.mxu3 %vm360_vm0, %v351_v35 }
  0x3e   : > { %1090 = vmatpush.xpose.msk.msra.mxu0 %vm360_vm0, %v302_v36 }
  0x3f   : > { %1124 = vmatpush.xpose.msk.msra.mxu2 %vm360_vm0, %v334_v37 }
  0x40   : > { %1107 = vmatpush.xpose.msk.msra.mxu1 %vm360_vm0, %v318_v38 }
  0x41   : > { %1141 = vmatpush.xpose.msk.msra.mxu3 %vm360_vm0, %v350_v39 }
  0x42   : > { %1091 = vmatpush.xpose.msk.msra.mxu0 %vm360_vm0, %v301_v40 }
  0x43   : > { %1125 = vmatpush.xpose.msk.msra.mxu2 %vm360_vm0, %v333_v41 }
  0x44   : > { %1108 = vmatpush.xpose.msk.msra.mxu1 %vm360_vm0, %v317_v42 }
  0x45   : > { %1142 = vmatpush.xpose.msk.msra.mxu3 %vm360_vm0, %v349_v43 }
  0x46   : > { %1092 = vmatpush.xpose.msk.msra.mxu0 %vm360_vm0, %v300_v44 }
  0x47   : > { %1126 = vmatpush.xpose.msk.msra.mxu2 %vm360_vm0, %v332_v45  ;;  %v753_v45 = vld [vmem:[%s1585_s14 + $0x48] sm:$0xff] }
  0x48   : > { %1109 = vmatpush.xpose.msk.msra.mxu1 %vm360_vm0, %v316_v46  ;;  %v773_v46 = vld [vmem:[%s1585_s14 + $0xe8] sm:$0xff] }
  0x49   : > { %1143 = vmatpush.xpose.msk.msra.mxu3 %vm360_vm0, %v348_v47  ;;  %v788_v47 = vld [vmem:[%s1585_s14 + $0x160] sm:$0xff] }
  0x4a   : > { %1093 = vmatpush.xpose.msk.msra.mxu0 %vm360_vm0, %v299_v48  ;;  %v752_v48 = vld [vmem:[%s1585_s14 + $0x40] sm:$0xff] }
  0x4b   : > { %1127 = vmatpush.xpose.msk.msra.mxu2 %vm360_vm0, %v331_v49  ;;  %v772_v49 = vld [vmem:[%s1585_s14 + $0xe0] sm:$0xff] }
  0x4c   : > { %1110 = vmatpush.xpose.msk.msra.mxu1 %vm360_vm0, %v315_v50  ;;  %v787_v50 = vld [vmem:[%s1585_s14 + $0x158] sm:$0xff] }
  0x4d   : > { %1144 = vmatpush.xpose.msk.msra.mxu3 %vm360_vm0, %v347_v51  ;;  %v807_v51 = vld [vmem:[%s1585_s14 + $0x1f8] sm:$0xff] }
  0x4e   : > { %1094 = vmatpush.xpose.msk.msra.mxu0 %vm360_vm0, %v298_v52  ;;  %v751_v52 = vld [vmem:[%s1585_s14 + $0x38] sm:$0xff] }
  0x4f   : > { %1128 = vmatpush.xpose.msk.msra.mxu2 %vm360_vm0, %v330_v53  ;;  %v771_v53 = vld [vmem:[%s1585_s14 + $0xd8] sm:$0xff] }
  0x50   : > { %1111 = vmatpush.xpose.msk.msra.mxu1 %vm360_vm0, %v314_v54  ;;  %v786_v54 = vld [vmem:[%s1585_s14 + $0x150] sm:$0xff] }
  0x51   : > { %1145 = vmatpush.xpose.msk.msra.mxu3 %vm360_vm0, %v346_v55  ;;  %v806_v55 = vld [vmem:[%s1585_s14 + $0x1f0] sm:$0xff] }
  0x52   : > { %1095 = vmatpush.xpose.msk.msra.mxu0 %vm360_vm0, %v297_v56  ;;  %v750_v56 = vld [vmem:[%s1585_s14 + $0x30] sm:$0xff] }
  0x53   : > { %1129 = vmatpush.xpose.msk.msra.mxu2 %vm360_vm0, %v329_v57  ;;  %v770_v57 = vld [vmem:[%s1585_s14 + $0xd0] sm:$0xff] }
  0x54   : > { %1112 = vmatpush.xpose.msk.msra.mxu1 %vm360_vm0, %v313_v58  ;;  %v785_v58 = vld [vmem:[%s1585_s14 + $0x148] sm:$0xff] }
  0x55   : > { %1146 = vmatpush.xpose.msk.msra.mxu3 %vm360_vm0, %v345_v59  ;;  %v805_v59 = vld [vmem:[%s1585_s14 + $0x1e8] sm:$0xff] }
  0x56   : > { %1096 = vmatpush.xpose.msk.msra.mxu0 %vm360_vm0, %v296_v62  ;;  %v784_v62 = vld [vmem:[%s1585_s14 + $0x140] sm:$0xff] }
  0x57   : > { %1130 = vmatpush.xpose.msk.msra.mxu2 %vm360_vm0, %v328_v63  ;;  %v804_v63 = vld [vmem:[%s1585_s14 + $0x1e0] sm:$0xff] }
  0x58   : > { %1113 = vmatpush.xpose.msk.msra.mxu1 %vm360_vm0, %v312_v1  ;;  %v768_v1 = vld [vmem:[%s1585_s14 + $0xc0] sm:$0xff] }
  0x59   : > { %1147 = vmatpush.xpose.msk.msra.mxu3 %vm360_vm0, %v344_v5  ;;  %1097 = vmatmul.msk.f32.vlgmr.msra.gmra.mxu0 %vm360_vm0, %v292_v3  ;;  %v803_v3 = vld [vmem:[%s1585_s14 + $0x1d8] sm:$0xff] }
  0x5a   : > { %1131 = vmatmul.msk.f32.vlgmr.msra.gmra.mxu2 %vm360_vm0, %v294_v4  ;;  %808 = vmatpush.msrb.mxu0 %v759_v18  ;;  %v747_v4 = vld [vmem:[%s1585_s14 + $0x18] sm:$0xff] }
  0x5b   : > { %1114 = vmatmul.msk.f32.vlgmr.msra.gmra.mxu1 %vm360_vm0, %v293_v6  ;;  %848 = vmatpush.msrb.mxu2 %v791_v20  ;;  %v767_v5 = vld [vmem:[%s1585_s14 + $0xb8] sm:$0xff]  ;;  %v782_v6 = vld [vmem:[%s1585_s14 + $0x130] sm:$0xff] }
  0x5c   : > { %1148 = vmatmul.msk.f32.vlgmr.msra.gmra.mxu3 %vm360_vm0, %v295_v7  ;;  %809 = vmatpush.msrb.mxu0 %v758_v19  ;;  %v802_v7 = vld [vmem:[%s1585_s14 + $0x1d0] sm:$0xff]  ;;  %v779_v18 = vld [vmem:[%s1585_s14 + $0x118] sm:$0xff] }
  0x5d   : > { %828 = vmatpush.msrb.mxu1 %v775_v22  ;;  %849 = vmatpush.msrb.mxu2 %v790_v23  ;;  %v799_v19 = vld [vmem:[%s1585_s14 + $0x1b8] sm:$0xff]  ;;  %v798_v22 = vld [vmem:[%s1585_s14 + $0x1b0] sm:$0xff] }
  0x5e   : > { %810 = vmatpush.msrb.mxu0 %v757_v21  ;;  %868 = vmatpush.msrb.mxu3 %v807_v51  ;;  %v763_v20 = vld [vmem:[%s1585_s14 + $0x98] sm:$0xff]  ;;  %v778_v21 = vld [vmem:[%s1585_s14 + $0x110] sm:$0xff] }
  0x5f   : > { %829 = vmatpush.msrb.mxu1 %v774_v24  ;;  %850 = vmatpush.msrb.mxu2 %v789_v25  ;;  %v762_v23 = vld [vmem:[%s1585_s14 + $0x90] sm:$0xff]  ;;  %v777_v24 = vld [vmem:[%s1585_s14 + $0x108] sm:$0xff] }
  0x60   : > { %811 = vmatpush.msrb.mxu0 %v756_v26  ;;  %869 = vmatpush.msrb.mxu3 %v806_v55  ;;  %v797_v25 = vld [vmem:[%s1585_s14 + $0x1a8] sm:$0xff] }
  0x61   : > { %830 = vmatpush.msrb.mxu1 %v773_v46  ;;  %851 = vmatpush.msrb.mxu2 %v788_v47  ;;  %v761_v26 = vld [vmem:[%s1585_s14 + $0x88] sm:$0xff] }
  0x62   : > { %812 = vmatpush.msrb.mxu0 %v755_v28  ;;  %870 = vmatpush.msrb.mxu3 %v805_v59  ;;  %v796_v28 = vld [vmem:[%s1585_s14 + $0x1a0] sm:$0xff] }
  0x63   : > { %831 = vmatpush.msrb.mxu1 %v772_v49  ;;  %852 = vmatpush.msrb.mxu2 %v787_v50 }
  0x64   : > { %813 = vmatpush.msrb.mxu0 %v754_v30  ;;  %871 = vmatpush.msrb.mxu3 %v804_v63  ;;  %v795_v30 = vld [vmem:[%s1585_s14 + $0x198] sm:$0xff] }
  0x65   : > { %832 = vmatpush.msrb.mxu1 %v771_v53  ;;  %853 = vmatpush.msrb.mxu2 %v786_v54 }
  0x66   : > { %814 = vmatpush.msrb.mxu0 %v753_v45  ;;  %872 = vmatpush.msrb.mxu3 %v803_v3 }
  0x67   : > { %833 = vmatpush.msrb.mxu1 %v770_v57  ;;  %854 = vmatpush.msrb.mxu2 %v785_v58 }
  0x68   : > { %815 = vmatpush.msrb.mxu0 %v752_v48  ;;  %873 = vmatpush.msrb.mxu3 %v802_v7 }
  0x69   : > { %834 = vmatpush.msrb.mxu1 %v769_v61  ;;  %855 = vmatpush.msrb.mxu2 %v784_v62 }
  0x6a   : > { %816 = vmatpush.msrb.mxu0 %v751_v52 }
  0x6b   : > { %835 = vmatpush.msrb.mxu1 %v768_v1  ;;  %856 = vmatpush.msrb.mxu2 %v783_v2 }
  0x6c   : > { %817 = vmatpush.msrb.mxu0 %v750_v56 }
  0x6d   : > { %836 = vmatpush.msrb.mxu1 %v767_v5  ;;  %857 = vmatpush.msrb.mxu2 %v782_v6 }
  0x6e   : > { %818 = vmatpush.msrb.mxu0 %v749_v60 }
  0x6f   : > { %837 = vmatpush.msrb.mxu1 %v766_v9 }
  0x70   : > { %819 = vmatpush.msrb.mxu0 %v748_v0 }
  0x72   : > { %820 = vmatpush.msrb.mxu0 %v747_v4 }
  0x74   : > { %821 = vmatpush.msrb.mxu0 %v746_v8 }
  0xd6   : > { %v429_v10 = vpop.f32.mrf.mxu0 }
  0xd7   : > { %v648_v11 = vsel %vm647_vm1, %v429_v10, -inf  ;;  %v781_v10 = vld [vmem:[%s1585_s14 + $0x128] sm:$0xff] }
  0xd8   : > { %652 = vmax.xlane.f32.xlu1 %v648_v11  ;;  %v500_v12 = vpop.f32.mrf.mxu1  ;;  %858 = vmatpush.msrb.mxu2 %v781_v10 }
  0xd9   : > { %v649_v15 = vsel %vm647_vm1, %v500_v12, -inf  ;;  %v745_v12 = vld [vmem:[%s1585_s14 + $0x8] sm:$0xff] }
  0xda   : > { %822 = vmatpush.msrb.mxu0 %v745_v12 }
  0xdd   : > { %v571_v13 = vpop.f32.mrf.mxu2 }
  0xde   : > { %v650_v14 = vsel %vm647_vm1, %v571_v13, -inf  ;;  %v765_v13 = vld [vmem:[%s1585_s14 + $0xa8] sm:$0xff] }
  0xdf   : > { %656 = vmax.xlane.f32.xlu0 %v650_v14  ;;  %v642_v16 = vpop.f32.mrf.mxu3  ;;  %838 = vmatpush.msrb.mxu1 %v765_v13 }
  0xe0   : > { %654 = vmax.xlane.f32.xlu1 %v649_v15  ;;  %v651_v17 = vsel %vm647_vm1, %v642_v16, -inf  ;;  %v744_v16 = vld [vmem:[%s1585_s14] sm:$0xff] }
  0xe1   : > { %823 = vmatpush.msrb.mxu0 %v744_v16 }
  0xe7   : > { %658 = vmax.xlane.f32.xlu0 %v651_v17 }
 0x14b   : > { %v653_v27 = vpop.xlane.xlu1 %652 }
 0x14c   : > { %v660_v29 = vsub.f32 %v648_v11, %v653_v27  ;;  %v801_v11 = vld [vmem:[%s1585_s14 + $0x1c8] sm:$0xff]  ;;  %v776_v27 = vld [vmem:[%s1585_s14 + $0x100] sm:$0xff] }
 0x14d   : > { %874 = vmatpush.msrb.mxu3 %v801_v11 }
 0x14e   : > { %v664_v31 = vmul.f32 1.442695, %v660_v29  ;;  %v760_v29 = vld [vmem:[%s1585_s14 + $0x80] sm:$0xff] }
 0x150   : > { %1223 = vpow2.f32 %v664_v31  ;;  %v794_v31 = vld [vmem:[%s1585_s14 + $0x190] sm:$0xff] }
 0x152   : > { %v657_v32 = vpop.xlane.xlu0 %656 }
 0x153   : > { %v662_v33 = vsub.f32 %v650_v14, %v657_v32  ;;  %v655_v34 = vpop.xlane.xlu1 %654  ;;  %v780_v14 = vld [vmem:[%s1585_s14 + $0x120] sm:$0xff]  ;;  %v793_v32 = vld [vmem:[%s1585_s14 + $0x188] sm:$0xff] }
 0x154   : > { %v661_v36 = vsub.f32 %v649_v15, %v655_v34  ;;  %v800_v15 = vld [vmem:[%s1585_s14 + $0x1c0] sm:$0xff]  ;;  %859 = vmatpush.msrb.mxu2 %v780_v14 }
 0x155   : > { %v668_v35 = vmul.f32 1.442695, %v662_v33  ;;  %875 = vmatpush.msrb.mxu3 %v800_v15  ;;  %v792_v34 = vld [vmem:[%s1585_s14 + $0x180] sm:$0xff] }
 0x156   : > { %v1598_v37 = vpop.eup %1223  ;;  %v666_v38 = vmul.f32 1.442695, %v661_v36  ;;  %860 = vmatpush.msrb.mxu2 %v779_v18 }
 0x157   : > { %1225 = vpow2.f32 %v668_v35  ;;  %672 = vadd.xlane.f32.xlu0 %v1598_v37  ;;  %876 = vmatpush.msrb.mxu3 %v799_v19 }
 0x158   : > { %1227 = vpow2.f32 %v666_v38  ;;  %861 = vmatpush.msrb.mxu2 %v778_v21 }
 0x159   : > { %877 = vmatpush.msrb.mxu3 %v798_v22 }
 0x15a   : > { %v659_v39 = vpop.xlane.xlu0 %658  ;;  %862 = vmatpush.msrb.mxu2 %v777_v24 }
 0x15b   : > { %v663_v40 = vsub.f32 %v651_v17, %v659_v39  ;;  %v764_v17 = vld [vmem:[%s1585_s14 + $0xa0] sm:$0xff]  ;;  %878 = vmatpush.msrb.mxu3 %v797_v25 }
 0x15c   : > { %839 = vmatpush.msrb.mxu1 %v764_v17  ;;  %863 = vmatpush.msrb.mxu2 %v776_v27 }
 0x15d   : > { %v1601_v41 = vpop.eup %1225  ;;  %v670_v42 = vmul.f32 1.442695, %v663_v40  ;;  %879 = vmatpush.msrb.mxu3 %v796_v28 }
 0x15e   : > { %676 = vadd.xlane.f32.xlu2 %v1601_v41  ;;  %v1604_v43 = vpop.eup %1227  ;;  %840 = vmatpush.msrb.mxu1 %v763_v20 }
 0x15f   : > { %1229 = vpow2.f32 %v670_v42  ;;  %674 = vadd.xlane.f32.xlu1 %v1604_v43  ;;  %880 = vmatpush.msrb.mxu3 %v795_v30 }
 0x160   : > { %841 = vmatpush.msrb.mxu1 %v762_v23 }
 0x161   : > { %881 = vmatpush.msrb.mxu3 %v794_v31 }
 0x162   : > { %842 = vmatpush.msrb.mxu1 %v761_v26 }
 0x163   : > { %882 = vmatpush.msrb.mxu3 %v793_v32 }
 0x164   : > { %843 = vmatpush.msrb.mxu1 %v760_v29 }
 0x165   : > { %v1607_v44 = vpop.eup %1229  ;;  %883 = vmatpush.msrb.mxu3 %v792_v34 }
 0x166   : > { %678 = vadd.xlane.f32.xlu2 %v1607_v44 }
 0x1ca   : > { %v673_v33 = vpop.xlane.xlu0 %672 }
 0x1cb   : > { %1231 = vrcp.f32 %v673_v33  ;;  %v691_v42 = vand.u32 2147483648, %v673_v33  ;;  %v689_v46 = vand.u32 2147483647, %v673_v33  ;;  %vm685_vm3 = vweird.f32 %v673_v33 }
 0x1cd   : > { %v692_v52 = vor.u32 1.1754944e-38, %v691_v42  ;;  %vm690_vm5 = vcmp.eq.f32.partialorder %v689_v46, 8.507059e+37 }
 0x1d1   : > { %v677_v35 = vpop.xlane.xlu2 %676  ;;  %v1232_v36 = vpop.eup %1231 }
 0x1d2   : > { %1233 = vrcp.f32 %v677_v35  ;;  %v681_v38 = vmul.f32 %v1232_v36, %v673_v33  ;;  %v675_v39 = vpop.xlane.xlu1 %674  ;;  %vm686_vm2 = vweird.f32 %v1232_v36  ;;  %v719_v56 = vand.u32 2147483648, %v677_v35 }
 0x1d3   : > { %1235 = vrcp.f32 %v675_v39  ;;  %vm687_vm4 = vmor %vm685_vm3, %vm686_vm2  ;;  %v717_v58 = vand.u32 2147483647, %v677_v35  ;;  %vm713_vm7 = vweird.f32 %v677_v35  ;;  %v705_v62 = vand.u32 2147483648, %v675_v39 }
 0x1d4   : > { %v682_v40 = vsub.f32 1.0, %v681_v38  ;;  %v703_v0 = vand.u32 2147483647, %v675_v39  ;;  %v720_v3 = vor.u32 1.1754944e-38, %v719_v56  ;;  %vm699_vm9 = vweird.f32 %v675_v39 }
 0x1d5   : > { %vm718_vm11 = vcmp.eq.f32.partialorder %v717_v58, 8.507059e+37  ;;  %v706_v6 = vor.u32 1.1754944e-38, %v705_v62 }
 0x1d6   : > { %v683_v45 = vmul.f32 %v1232_v36, %v682_v40  ;;  %vm704_vm13 = vcmp.eq.f32.partialorder %v703_v0, 8.507059e+37 }
 0x1d8   : > { %v1234_v47 = vpop.eup %1233  ;;  %v684_v48 = vadd.f32 %v1232_v36, %v683_v45 }
 0x1d9   : > { %v709_v49 = vmul.f32 %v1234_v47, %v677_v35  ;;  %v679_v50 = vpop.xlane.xlu2 %678  ;;  %v1236_v51 = vpop.eup %1235  ;;  %vm714_vm6 = vweird.f32 %v1234_v47 }
 0x1da   : > { %1237 = vrcp.f32 %v679_v50  ;;  %v695_v54 = vmul.f32 %v1236_v51, %v675_v39  ;;  %v688_v55 = vsel %vm687_vm4, %v1232_v36, %v684_v48  ;;  %vm700_vm8 = vweird.f32 %v1236_v51  ;;  %vm715_vm10 = vmor %vm713_vm7, %vm714_vm6 }
 0x1db   : > { %v710_v53 = vsub.f32 1.0, %v709_v49  ;;  %v693_v57 = vsel %vm690_vm5, %v692_v52, %v688_v55  ;;  %vm701_vm12 = vmor %vm699_vm9, %vm700_vm8  ;;  %v733_v11 = vand.u32 2147483648, %v679_v50  ;;  %v731_v14 = vand.u32 2147483647, %v679_v50 }
 0x1dc   : > { %v696_v60 = vsub.f32 1.0, %v695_v54  ;;  %v736_v61 = vmul.f32 %v1598_v37, %v693_v57  ;;  %vm727_vm15 = vweird.f32 %v679_v50 }
 0x1dd   : > { %v711_v59 = vmul.f32 %v1234_v47, %v710_v53  ;;  %vm732_vm2 = vcmp.eq.f32.partialorder %v731_v14, 8.507059e+37 }
 0x1de   : > { %v697_v63 = vmul.f32 %v1236_v51, %v696_v60  ;;  %740 = vst [vmem:[%s1670_s24] sm:$0xff] %v736_v61  ;;  %824 = vmatmul.f32.vlgmr.msrb.gmra.mxu0 %v736_v61 }
 0x1df   : > { %v712_v1 = vadd.f32 %v1234_v47, %v711_v59 }
 0x1e0   : > { %v1238_v2 = vpop.eup %1237  ;;  %v698_v4 = vadd.f32 %v1236_v51, %v697_v63 }
 0x1e1   : > { %v723_v37 = vmul.f32 %v1238_v2, %v679_v50  ;;  %v716_v5 = vsel %vm715_vm10, %v1234_v47, %v712_v1  ;;  %vm728_vm14 = vweird.f32 %v1238_v2 }
 0x1e2   : > { %v721_v7 = vsel %vm718_vm11, %v720_v3, %v716_v5  ;;  %v702_v10 = vsel %vm701_vm12, %v1236_v51, %v698_v4  ;;  %vm729_vm1 = vmor %vm727_vm15, %vm728_vm14 }
 0x1e3   : > { %v724_v8 = vsub.f32 1.0, %v723_v37  ;;  %v738_v9 = vmul.f32 %v1601_v41, %v721_v7  ;;  %v707_v12 = vsel %vm704_vm13, %v706_v6, %v702_v10  ;;  %v734_v41 = vor.u32 1.1754944e-38, %v733_v11 }
 0x1e4   : > { %v737_v15 = vmul.f32 %v1604_v43, %v707_v12 }
 0x1e5   : > { %v725_v13 = vmul.f32 %v1238_v2, %v724_v8  ;;  %742 = vst [vmem:[%s1670_s24 + $0x10] sm:$0xff] %v738_v9  ;;  %864 = vmatmul.f32.vlgmr.msrb.gmra.mxu2 %v738_v9 }
 0x1e6   : > { %741 = vst [vmem:[%s1670_s24 + $0x8] sm:$0xff] %v737_v15  ;;  %844 = vmatmul.f32.vlgmr.msrb.gmra.mxu1 %v737_v15 }
 0x1e7   : > { %v726_v16 = vadd.f32 %v1238_v2, %v725_v13 }
 0x1e9   : > { %v730_v17 = vsel %vm729_vm1, %v1238_v2, %v726_v16 }
 0x1ea   : > { %v735_v18 = vsel %vm732_vm2, %v734_v41, %v730_v17 }
 0x1eb   : > { %v739_v19 = vmul.f32 %v1607_v44, %v735_v18 }
 0x1ed   : > { %743 = vst [vmem:[%s1670_s24 + $0x18] sm:$0xff] %v739_v19  ;;  %884 = vmatmul.f32.vlgmr.msrb.gmra.mxu3 %v739_v19 }
 0x1ee   : > { %1266 = shalt.err (!%p1263_p5)
}
 0x1ef   : > { %s1351_s24 = smov 128   ;;  %s1352_s30 = smov 8  }
 0x1f0   : > { %1162 = dma.vmem_to_hbm [thread:$0]  (%p1418_p4), %s930_s26, 512, %s932_s7, %s898_s8, %s1351_s24, %s1351_s24, %s1352_s30  }
 0x1f1   : > { %s255_s5 = scalar_lea.vmem [#allocation2], %s1071_s22  ;;  %s910_s10 = scalar_lea.hbm %s1746_s3, %s1159_s29 }
 0x1f2   : > { %s911_s11 = sshll.u32 %s255_s5, 4  ;;  %s913_s12 = sshll.u32 %s910_s10, 4  ;;  %s912_s11 = int_to_ptr.vmem [resolvable:$true] %s911_s11  ;;  %s914_s12 = int_to_ptr.hbm [resolvable:$true] %s913_s12 }
 0x1f3   : > { %s893_s22 = scalar_lea.sflag [#allocation3], %s1664_s21  ;;  %s1281_s26 = sshra.s32 %s914_s12, 4  ;;  %s1282_s26 = int_to_ptr.hbm [resolvable:$true] %s1281_s26 }
 0x1f4   : > { %s1283_s7 = scalar_lea.hbm %s1282_s26, 32  ;;  %s1287_s18 = scalar_lea.hbm %s1746_s3, 64 }
 0x1f5   : > { %p1284_p6 = scmp.ne.s32.totalorder %s1282_s26, %s1283_s7  ;;  %p1288_p10 = scmp.lt.s32.totalorder %s1282_s26, %s1746_s3 }
 0x1f6   : > { %p1289_p11 = scmp.lt.s32.totalorder %s1287_s18, %s1283_s7 }
 0x1f7   : > { %p1285_p7 = pnand %p1284_p6, %p1418_p4 }
 0x1f8   : > { %p1290_p12 = por %p1289_p11, %p1288_p10 }
 0x1f9   : > { %p1286_p9 = pneg %p1285_p7 }
 0x1fb   : > { %p1291_p13 = pnand %p1290_p12, %p1286_p9 }
 0x25b   : > { %v825_v43 = vpop.f32.mrf.mxu0 }
 0x25c   : > { %888 = vst.msk [vmem:[%s255_s5] sm:$0xff] %vm360_vm0, %v825_v43 }
 0x263   : > { %v845_v44 = vpop.f32.mrf.mxu1 }
 0x264   : > { %889 = vst.msk [vmem:[%s255_s5 + $0x8] sm:$0xff] %vm360_vm0, %v845_v44 }
 0x268   : > { %v865_v20 = vpop.f32.mrf.mxu2 }
 0x269   : > { %890 = vst.msk [vmem:[%s255_s5 + $0x10] sm:$0xff] %vm360_vm0, %v865_v20 }
 0x270   : > { %v885_v21 = vpop.f32.mrf.mxu3 }
 0x271   : > { %891 = vst.msk [vmem:[%s255_s5 + $0x18] sm:$0xff] %vm360_vm0, %v885_v21 }
 0x272   : > { %1294 = shalt.err (!%p1291_p13)
}
 0x273   : > { %1161 = dma.vmem_to_hbm [thread:$0]  (%p1418_p4), %s912_s11, 512, %s914_s12, %s893_s22, %s1351_s24, %s1351_s24, %s1352_s30  }
 0x274 PF: > { %p1172_p0 = scmp.ge.s32.totalorder %s1349_s20, 2  ;;  %s946_s21 = sand.u32 1, %s1329_s15  }
 0x275   : > { %s947_s5 = scalar_lea.sflag [#allocation3], %s946_s21 }
 0x276   : > { %p1166_p1 = pnand %p1172_p0, %p1425_p8 }
 0x278   : > { %p1167_p2 = pneg %p1166_p1 }
 0x27a   : > { %1320 = dma.done.wait (%p1167_p2), %s947_s5, 512  }
 0x27b   : > { %1322 = vsyncadd (%p1167_p2), %s947_s5, 4294966784  ;;  %s957_s6 = scalar_lea.sflag [#allocation5], %s946_s21 }
 0x27c   : > { %1324 = dma.done.wait (%p1167_p2), %s957_s6, 512  }
 0x27d   : > { %1326 = vsyncadd (%p1167_p2), %s957_s6, 4294966784  ;;  %s21_s20 = sadd.s32 1, %s1349_s20   ;;  %s1750_s15 = smov %s1333_s16 }
 0x27e   : > { %p18_p3 = scmp.ge.s32.totalorder %s21_s20, 4   ;;  %s1751_s16 = smov %s1337_s17 }
 0x27f   : > { %s1752_s17 = smov %s1431_s28  ;;  %s1753_s18 = smov %s1345_s19 }
 0x280   : > { %s1754_s19 = smov %s1756_s23  ;;  %20 = sbr.rel (!%p18_p3) target bundleno = 6 (0x6), region = 90 }
 0x285   :  { %963 = vsyncpa [#allocation3], 1 }
 0x286   :  { %965 = vsyncpa [#allocation3 + $0x1], 1 }
 0x287   :  { %966 = vsyncpa [#allocation5], 1 }
 0x288   :  { %968 = vsyncpa [#allocation5 + $0x1], 1 }

</bundles_post_ra>
